<compile_context>
chip_gen: v5e
topology: v5e:2x2
jax: 0.10.0
libtpu: 0.0.40
codegen_flags: <defaults>
</compile_context>

<pallas_src>
import functools

import jax
import jax.numpy as jnp
from jax.experimental import pallas as pl
from jax.experimental.pallas import tpu as pltpu


def _knowledge_embeddings_kernel(
    input_ids_ref,     # SMEM (B*S,) int32   — scalar-prefetched word ids (drive the DMA gather)
    entity_ids_ref,    # VMEM (1, TS, 1) int32
    triple_ids_ref,    # VMEM (1, TS, 1) int32
    word_hbm_ref,      # HBM  (V_word, H)     — word table, stays in HBM (pl.ANY)
    small_tab_ref,     # VMEM (V_ent+V_tri, H) bf16 — [entity ; triple+position] combined table
    gamma_ref,         # VMEM (1, H) f32
    beta_ref,          # VMEM (1, H) f32
    out_ref,           # VMEM (1, TS, H) f32
    word_buf,          # VMEM scratch (TS, H) word-table dtype
    copy_sem,          # one shared DMA semaphore for the whole row gather
    *,
    seq_len: int,
    tile_s: int,
    v_ent: int,
    eps: float,
):
    b = pl.program_id(0)
    st = pl.program_id(1)
    base = b * seq_len + st * tile_s

    # ---- 1) Issue word-embedding row gather: one DMA per token, HBM -> VMEM scratch. ----------
    # All copies signal the same semaphore; we drain it after the small-table matmul below.
    @pl.loop(0, tile_s)
    def _issue(t):
        row = input_ids_ref[base + t]
        pltpu.make_async_copy(
            word_hbm_ref.at[pl.ds(row, 1)],
            word_buf.at[pl.ds(t, 1)],
            copy_sem,
        ).start()

    # ---- 2) Fused small-table lookup while the DMAs are in flight. ----------------------------
    # One (TS, V_ent+V_tri) one-hot with two hits per row:
    #   cols [0, V_ent)           select the entity embedding,
    #   cols [V_ent, V_ent+V_tri) select the (triple + position) combined embedding.
    g = gamma_ref[...]                     # (1, H) — read once per tile
    bt = beta_ref[...]                     # (1, H)
    v_small = small_tab_ref.shape[0]
    ent_ids = entity_ids_ref[0]            # (TS, 1) int32
    tri_ids = triple_ids_ref[0]            # (TS, 1) int32
    col = jax.lax.broadcasted_iota(jnp.int32, (tile_s, v_small), 1)
    hit = jnp.logical_or(col == ent_ids, col == (tri_ids + v_ent))
    onehot = hit.astype(small_tab_ref.dtype)
    small_emb = jnp.dot(onehot, small_tab_ref[...],
                        preferred_element_type=jnp.float32)     # (TS, H) f32 = ent + tri + pos

    # ---- 3) Drain the gather (one wait per row; descriptor sizes match the issued copies). -----
    @pl.loop(0, tile_s)
    def _wait_all(t):
        pltpu.make_async_copy(
            word_hbm_ref.at[pl.ds(0, 1)],   # dummy src of matching size; wait keys off the sem
            word_buf.at[pl.ds(t, 1)],
            copy_sem,
        ).wait()

    emb = small_emb + word_buf[...].astype(jnp.float32)          # (TS, H)

    # ---- 4) LayerNorm over the hidden dim (f32 epilogue; v5e has no bf16 VPU). -----------------
    mean = jnp.mean(emb, axis=-1, keepdims=True)
    centered = emb - mean
    var = jnp.mean(centered * centered, axis=-1, keepdims=True)
    normed = centered * jax.lax.rsqrt(var + eps)
    out = normed * g + bt

    # Dropout: identity in eval mode.
    out_ref[0, :, :] = out.astype(out_ref.dtype)


def knowledge_embeddings(
    input_ids, entity_ids, triple_ids, position_ids,   # position_ids unused by the reference forward
    word_table, entity_table, triple_table, position_table,
    gamma, beta, *, eps=1e-12, small_table_dtype=jnp.bfloat16, tile_s=None,
):
    B, S = input_ids.shape
    H = word_table.shape[1]
    if tile_s is None:
        tile_s = min(S, 128)
    assert S % tile_s == 0, "seq length must be divisible by the sequence tile"

    v_ent = int(entity_table.shape[0])
    # position table is indexed by triple_ids in the reference forward -> fold triple+position,
    # then stack with the entity table so one matmul resolves all three small lookups.
    combined_small = jnp.concatenate(
        [entity_table.astype(jnp.float32),
         triple_table.astype(jnp.float32) + position_table.astype(jnp.float32)],
        axis=0,
    ).astype(small_table_dtype)
    v_small = int(combined_small.shape[0])

    # Word table stays in HBM in its native dtype; only S*H bytes of it are DMA-gathered per call.
    word_t = word_table
    word_dtype = word_t.dtype

    ids_flat = input_ids.astype(jnp.int32).reshape(-1)           # SMEM scalar-prefetch operand
    ids3 = lambda x: x.astype(jnp.int32).reshape(B, S, 1)        # VMEM vector operands (one-hot path)
    g2 = gamma.reshape(1, H).astype(jnp.float32)
    b2 = beta.reshape(1, H).astype(jnp.float32)

    # Explicit VMEM budget (v7x has only 64 MiB physical; default scoped limit is 32 MiB).
    small_bytes = v_small * H * jnp.dtype(small_table_dtype).itemsize
    blk_bytes = (
        2 * (2 * tile_s * 4)                 # two id blocks, double-buffered
        + small_bytes                        # combined small table (resident)
        + 2 * H * 4                          # gamma + beta
        + 2 * (tile_s * H * 4)               # output block, double-buffered
    )
    scratch_bytes = tile_s * H * jnp.dtype(word_dtype).itemsize
    vmem_limit = int(min(max(4 * (blk_bytes + scratch_bytes), 8 << 20), 48 << 20))

    kernel = functools.partial(
        _knowledge_embeddings_kernel,
        seq_len=S, tile_s=tile_s, v_ent=v_ent, eps=eps,
    )

    return pl.pallas_call(
        kernel,
        out_shape=jax.ShapeDtypeStruct((B, S, H), jnp.float32),
        grid_spec=pltpu.PrefetchScalarGridSpec(
            num_scalar_prefetch=1,                         # input_ids -> SMEM
            grid=(B, S // tile_s),
            in_specs=[
                pl.BlockSpec((1, tile_s, 1), lambda b, s, ids: (b, s, 0)),   # entity_ids
                pl.BlockSpec((1, tile_s, 1), lambda b, s, ids: (b, s, 0)),   # triple_ids
                pl.BlockSpec(memory_space=pl.ANY),                            # word table (HBM)
                pl.BlockSpec((v_small, H), lambda b, s, ids: (0, 0)),         # combined small table
                pl.BlockSpec((1, H), lambda b, s, ids: (0, 0)),               # gamma
                pl.BlockSpec((1, H), lambda b, s, ids: (0, 0)),               # beta
            ],
            out_specs=pl.BlockSpec((1, tile_s, H), lambda b, s, ids: (b, s, 0)),
            scratch_shapes=[
                pltpu.VMEM((tile_s, H), word_dtype),       # gathered word rows
                pltpu.SemaphoreType.DMA(()),               # single shared gather semaphore
            ],
        ),
        compiler_params=pltpu.CompilerParams(
            dimension_semantics=("parallel", "parallel"),
            vmem_limit_bytes=vmem_limit,
        ),
    )(ids_flat, ids3(entity_ids), ids3(triple_ids), word_t, combined_small, g2, b2)


def _reference(input_ids, entity_ids, triple_ids, word_t, ent_t, tripos_t, gamma, beta, eps):
    # Same math as the PyTorch module; ent_t / tripos_t are the (bf16-quantized) small tables
    # actually used by the kernel, so the check isolates gather/matmul/LayerNorm correctness.
    emb = word_t[input_ids] + ent_t[entity_ids] + tripos_t[triple_ids]
    mean = emb.mean(-1, keepdims=True)
    var = ((emb - mean) ** 2).mean(-1, keepdims=True)
    return (emb - mean) / jnp.sqrt(var + eps) * gamma + beta


if __name__ == "__main__":
    # small config
    B, S, H = 2, 8, 32
    vocab_size = 64
    max_entity = 16
    max_triple = 16
    max_position = 16
    pad_token_id = 0
    eps = 1e-12

    key = jax.random.PRNGKey(0)
    kw, ke, kt, kp, kg, kb, ki1, ki2, ki3 = jax.random.split(key, 9)

    # deterministic parameter init (~ N(0, 0.02), pad row zeroed like nn.Embedding padding_idx)
    word_table = 0.02 * jax.random.normal(kw, (vocab_size, H), jnp.float32)
    word_table = word_table.at[pad_token_id].set(0.0)
    entity_table = 0.02 * jax.random.normal(ke, (max_entity, H), jnp.float32)
    triple_table = 0.02 * jax.random.normal(kt, (max_triple, H), jnp.float32)
    position_table = 0.02 * jax.random.normal(kp, (max_position, H), jnp.float32)
    gamma = 1.0 + 0.1 * jax.random.normal(kg, (H,), jnp.float32)
    beta = 0.1 * jax.random.normal(kb, (H,), jnp.float32)

    input_ids = jax.random.randint(ki1, (B, S), 0, vocab_size, jnp.int32)
    entity_ids = jax.random.randint(ki2, (B, S), 0, max_entity, jnp.int32)
    triple_ids = jax.random.randint(ki3, (B, S), 0, max_triple, jnp.int32)
    position_ids = jnp.broadcast_to(jnp.arange(S, dtype=jnp.int32), (B, S))  # unused by forward (as in reference)

    out = knowledge_embeddings(
        input_ids, entity_ids, triple_ids, position_ids,
        word_table, entity_table, triple_table, position_table,
        gamma, beta, eps=eps,
    )
    out = jax.block_until_ready(out)

    # Reference with the same bf16 quantization the kernel applies to the small (VMEM) tables.
    ent_q = entity_table.astype(jnp.bfloat16).astype(jnp.float32)
    tripos_q = (triple_table + position_table).astype(jnp.bfloat16).astype(jnp.float32)
    ref = _reference(input_ids, entity_ids, triple_ids,
                     word_table, ent_q, tripos_q, gamma, beta, eps)

    assert out.shape == (B, S, H)
    assert jnp.allclose(out, ref, atol=1e-3, rtol=1e-3), float(jnp.max(jnp.abs(out - ref)))

    print("KERNEL_OK")
</pallas_src>

<mosaic_0001>
module attributes {stable_mosaic.version = 11 : i64} {
  func.func @_knowledge_embeddings_kernel(%arg0: i32, %arg1: i32, %arg2: memref<16xi32, #tpu.memory_space<smem>>, %arg3: memref<1x8x1xi32, #tpu.memory_space<vmem>>, %arg4: memref<1x8x1xi32, #tpu.memory_space<vmem>>, %arg5: memref<64x32xf32, #tpu.memory_space<any>>, %arg6: memref<32x32xbf16, #tpu.memory_space<vmem>>, %arg7: memref<1x32xf32, #tpu.memory_space<vmem>>, %arg8: memref<1x32xf32, #tpu.memory_space<vmem>>, %arg9: memref<1x8x32xf32, #tpu.memory_space<vmem>>, %arg10: memref<8x32xf32, #tpu.memory_space<vmem>>, %arg11: memref<!tpu.dma_semaphore, #tpu.memory_space<semaphore_mem>>) attributes {dimension_semantics = [#tpu.dimension_semantics<parallel>, #tpu.dimension_semantics<parallel>], iteration_bounds = array<i64: 2, 1>, scalar_prefetch = 1 : i64, scratch_operands = 2 : i64, tpu.core_type = #tpu.core_type<tc>, window_params = [{transform_indices = @transform_0, window_bounds = array<i64: 1, 8, 1>}, {transform_indices = @transform_1, window_bounds = array<i64: 1, 8, 1>}, {}, {pipeline_mode = #tpu.pipeline_mode<synchronous>, transform_indices = @transform_3, window_bounds = array<i64: 32, 32>}, {pipeline_mode = #tpu.pipeline_mode<synchronous>, transform_indices = @transform_4, window_bounds = array<i64: 1, 32>}, {pipeline_mode = #tpu.pipeline_mode<synchronous>, transform_indices = @transform_5, window_bounds = array<i64: 1, 32>}, {transform_indices = @transform_6, window_bounds = array<i64: 1, 8, 32>}]} {
    %c8_i32 = arith.constant 8 : i32
    %0 = arith.muli %arg0, %c8_i32 : i32
    %c8_i32_0 = arith.constant 8 : i32
    %1 = arith.muli %arg1, %c8_i32_0 : i32
    %2 = arith.addi %0, %1 : i32
    %c0_i32 = arith.constant 0 : i32
    %c8_i32_1 = arith.constant 8 : i32
    %3 = arith.addi %c0_i32, %c8_i32_1 : i32
    %c1_i32 = arith.constant 1 : i32
    scf.for %arg12 = %c0_i32 to %3 step %c1_i32  : i32 {
      %c1_i32_28 = arith.constant 1 : i32
      %49 = arith.muli %arg12, %c1_i32_28 : i32
      %c0_i32_29 = arith.constant 0 : i32
      %50 = arith.addi %c0_i32_29, %49 : i32
      %51 = arith.addi %2, %50 : i32
      %52 = arith.index_cast %51 : i32 to index
      %53 = memref.load %arg2[%52] : memref<16xi32, #tpu.memory_space<smem>>
      %c0_i32_30 = arith.constant 0 : i32
      %54 = tpu.memref_slice %arg5[%53, %c0_i32_30] : memref<64x32xf32, #tpu.memory_space<any>> -> memref<1x32xf32, #tpu.memory_space<any>>
      %c0_i32_31 = arith.constant 0 : i32
      %55 = tpu.memref_slice %arg10[%50, %c0_i32_31] : memref<8x32xf32, #tpu.memory_space<vmem>> -> memref<1x32xf32, #tpu.memory_space<vmem>>
      tpu.enqueue_dma source(%54 : memref<1x32xf32, #tpu.memory_space<any>>) target(%55 : memref<1x32xf32, #tpu.memory_space<vmem>>) target_semaphore(%arg11 : memref<!tpu.dma_semaphore, #tpu.memory_space<semaphore_mem>>)
    }
    %c8_i32_2 = arith.constant 8 : i32
    %c0 = arith.constant 0 : index
    %c0_3 = arith.constant 0 : index
    %4 = vector.load %arg7[%c0, %c0_3] : memref<1x32xf32, #tpu.memory_space<vmem>>, vector<1x32xf32>
    %c0_4 = arith.constant 0 : index
    %c0_5 = arith.constant 0 : index
    %5 = vector.load %arg8[%c0_4, %c0_5] : memref<1x32xf32, #tpu.memory_space<vmem>>, vector<1x32xf32>
    %c0_6 = arith.constant 0 : index
    %c0_7 = arith.constant 0 : index
    %c0_8 = arith.constant 0 : index
    %6 = vector.load %arg3[%c0_6, %c0_7, %c0_8] : memref<1x8x1xi32, #tpu.memory_space<vmem>>, vector<1x8x1xi32>
    %7 = vector.shape_cast %6 : vector<1x8x1xi32> to vector<8x1xi32>
    %c0_9 = arith.constant 0 : index
    %c0_10 = arith.constant 0 : index
    %c0_11 = arith.constant 0 : index
    %8 = vector.load %arg4[%c0_9, %c0_10, %c0_11] : memref<1x8x1xi32, #tpu.memory_space<vmem>>, vector<1x8x1xi32>
    %9 = vector.shape_cast %8 : vector<1x8x1xi32> to vector<8x1xi32>
    %10 = tpu.iota {dimensions = array<i32: 1>} : vector<8x32xi32>
    %11 = vector.broadcast %7 : vector<8x1xi32> to vector<8x32xi32>
    %12 = arith.cmpi eq, %10, %11 : vector<8x32xi32>
    %c16_i32 = arith.constant 16 : i32
    %13 = vector.broadcast %c16_i32 : i32 to vector<8x1xi32>
    %14 = arith.addi %9, %13 : vector<8x1xi32>
    %15 = vector.broadcast %14 : vector<8x1xi32> to vector<8x32xi32>
    %16 = arith.cmpi eq, %10, %15 : vector<8x32xi32>
    %17 = arith.ori %12, %16 : vector<8x32xi1>
    %18 = arith.extui %17 : vector<8x32xi1> to vector<8x32xi32>
    %19 = arith.sitofp %18 : vector<8x32xi32> to vector<8x32xf32>
    %20 = arith.truncf %19 : vector<8x32xf32> to vector<8x32xbf16>
    %c0_12 = arith.constant 0 : index
    %c0_13 = arith.constant 0 : index
    %21 = vector.load %arg6[%c0_12, %c0_13] : memref<32x32xbf16, #tpu.memory_space<vmem>>, vector<32x32xbf16>
    %cst = arith.constant dense<0.000000e+00> : vector<8x32xf32>
    %22 = tpu.matmul %20, %21, %cst {dimension_numbers = #tpu.dot_dimension_numbers<[1], [0], [0], [1], [0, 0, 1, 1], [], []>} : vector<8x32xbf16>, vector<32x32xbf16>, vector<8x32xf32> -> vector<8x32xf32>
    %c0_i32_14 = arith.constant 0 : i32
    %c8_i32_15 = arith.constant 8 : i32
    %23 = arith.addi %c0_i32_14, %c8_i32_15 : i32
    %c1_i32_16 = arith.constant 1 : i32
    scf.for %arg12 = %c0_i32_14 to %23 step %c1_i32_16  : i32 {
      %c1_i32_28 = arith.constant 1 : i32
      %49 = arith.muli %arg12, %c1_i32_28 : i32
      %c0_i32_29 = arith.constant 0 : i32
      %50 = arith.addi %c0_i32_29, %49 : i32
      %c0_i32_30 = arith.constant 0 : i32
      %c0_i32_31 = arith.constant 0 : i32
      %51 = tpu.memref_slice %arg5[%c0_i32_30, %c0_i32_31] : memref<64x32xf32, #tpu.memory_space<any>> -> memref<1x32xf32, #tpu.memory_space<any>>
      %c0_i32_32 = arith.constant 0 : i32
      %52 = tpu.memref_slice %arg10[%50, %c0_i32_32] : memref<8x32xf32, #tpu.memory_space<vmem>> -> memref<1x32xf32, #tpu.memory_space<vmem>>
      tpu.wait_dma2 semaphore(%arg11 : memref<!tpu.dma_semaphore, #tpu.memory_space<semaphore_mem>>) src(%51 : memref<1x32xf32, #tpu.memory_space<any>>) dst(%52 : memref<1x32xf32, #tpu.memory_space<vmem>>)
    }
    %c8_i32_17 = arith.constant 8 : i32
    %c0_18 = arith.constant 0 : index
    %c0_19 = arith.constant 0 : index
    %24 = vector.load %arg10[%c0_18, %c0_19] : memref<8x32xf32, #tpu.memory_space<vmem>>, vector<8x32xf32>
    %25 = arith.addf %22, %24 : vector<8x32xf32>
    %cst_20 = arith.constant dense<0.000000e+00> : vector<8xf32>
    %26 = vector.multi_reduction <add>, %25, %cst_20 [1] : vector<8x32xf32> to vector<8xf32>
    %27 = vector.shape_cast %26 : vector<8xf32> to vector<8x1xf32>
    %cst_21 = arith.constant 3.200000e+01 : f32
    %28 = vector.broadcast %cst_21 : f32 to vector<8x1xf32>
    %29 = arith.divf %27, %28 : vector<8x1xf32>
    %30 = vector.broadcast %29 : vector<8x1xf32> to vector<8x32xf32>
    %31 = arith.subf %25, %30 : vector<8x32xf32>
    %32 = arith.mulf %31, %31 : vector<8x32xf32>
    %cst_22 = arith.constant dense<0.000000e+00> : vector<8xf32>
    %33 = vector.multi_reduction <add>, %32, %cst_22 [1] : vector<8x32xf32> to vector<8xf32>
    %34 = vector.shape_cast %33 : vector<8xf32> to vector<8x1xf32>
    %cst_23 = arith.constant 3.200000e+01 : f32
    %35 = vector.broadcast %cst_23 : f32 to vector<8x1xf32>
    %36 = arith.divf %34, %35 : vector<8x1xf32>
    %cst_24 = arith.constant 9.99999996E-13 : f32
    %37 = vector.broadcast %cst_24 : f32 to vector<8x1xf32>
    %38 = arith.addf %36, %37 : vector<8x1xf32>
    %39 = math.rsqrt %38 : vector<8x1xf32>
    %40 = vector.broadcast %39 : vector<8x1xf32> to vector<8x32xf32>
    %41 = arith.mulf %31, %40 : vector<8x32xf32>
    %42 = vector.broadcast %4 : vector<1x32xf32> to vector<8x32xf32>
    %43 = arith.mulf %41, %42 : vector<8x32xf32>
    %44 = vector.broadcast %5 : vector<1x32xf32> to vector<8x32xf32>
    %45 = arith.addf %43, %44 : vector<8x32xf32>
    %c0_25 = arith.constant 0 : index
    %c0_26 = arith.constant 0 : index
    %c0_27 = arith.constant 0 : index
    %46 = vector.load %arg9[%c0_25, %c0_26, %c0_27] : memref<1x8x32xf32, #tpu.memory_space<vmem>>, vector<1x8x32xf32>
    %47 = vector.shape_cast %46 : vector<1x8x32xf32> to vector<8x32xf32>
    %48 = vector.shape_cast %45 : vector<8x32xf32> to vector<1x8x32xf32>
    tpu.vector_store %arg9[%c0_25, %c0_26, %c0_27], %48 {strides = array<i32>} : memref<1x8x32xf32, #tpu.memory_space<vmem>>, vector<1x8x32xf32>,
    return
  }
  func.func @transform_0(%arg0: i32, %arg1: i32, %arg2: memref<16xi32, #tpu.memory_space<smem>>) -> (i32, i32, i32) {
    %c0_i32 = arith.constant 0 : i32
    %c0_i32_0 = arith.constant 0 : i32
    return %arg0, %arg1, %c0_i32 : i32, i32, i32
  }
  func.func @transform_1(%arg0: i32, %arg1: i32, %arg2: memref<16xi32, #tpu.memory_space<smem>>) -> (i32, i32, i32) {
    %c0_i32 = arith.constant 0 : i32
    %c0_i32_0 = arith.constant 0 : i32
    return %arg0, %arg1, %c0_i32 : i32, i32, i32
  }
  func.func @transform_3(%arg0: i32, %arg1: i32, %arg2: memref<16xi32, #tpu.memory_space<smem>>) -> (i32, i32) {
    %c0_i32 = arith.constant 0 : i32
    %c0_i32_0 = arith.constant 0 : i32
    %c0_i32_1 = arith.constant 0 : i32
    return %c0_i32, %c0_i32_0 : i32, i32
  }
  func.func @transform_4(%arg0: i32, %arg1: i32, %arg2: memref<16xi32, #tpu.memory_space<smem>>) -> (i32, i32) {
    %c0_i32 = arith.constant 0 : i32
    %c0_i32_0 = arith.constant 0 : i32
    %c0_i32_1 = arith.constant 0 : i32
    return %c0_i32, %c0_i32_0 : i32, i32
  }
  func.func @transform_5(%arg0: i32, %arg1: i32, %arg2: memref<16xi32, #tpu.memory_space<smem>>) -> (i32, i32) {
    %c0_i32 = arith.constant 0 : i32
    %c0_i32_0 = arith.constant 0 : i32
    %c0_i32_1 = arith.constant 0 : i32
    return %c0_i32, %c0_i32_0 : i32, i32
  }
  func.func @transform_6(%arg0: i32, %arg1: i32, %arg2: memref<16xi32, #tpu.memory_space<smem>>) -> (i32, i32, i32) {
    %c0_i32 = arith.constant 0 : i32
    %c0_i32_0 = arith.constant 0 : i32
    return %arg0, %arg1, %c0_i32 : i32, i32, i32
  }
}

</mosaic_0001>

<bundles_post_ra>
// kernel: tpu_custom_call.1
= control target key start
LH: loop header
LB: loop body
LE: loop exit
PB: predicated region body
PF: predicated region fallthrough
CT: control target
= control target key end

     0   :  { %s774_s27 = smov [#allocation5]   ;;  %s967_s0 = inlined_call_operand.vmem [shape: s32[16], index: 0, kind: input, shape index: {}]   ;;  %s968_s1 = inlined_call_operand.vmem [shape: s32[2,8,1], index: 1, kind: input, shape index: {}]   ;;  %s969_s2 = inlined_call_operand.vmem [shape: s32[2,8,1], index: 2, kind: input, shape index: {}]   ;;  %s970_s3 = inlined_call_operand.vmem [shape: f32[64,32], index: 3, kind: input, shape index: {}]   ;;  %s971_s4 = inlined_call_operand.vmem [shape: bf16[32,32], index: 4, kind: input, shape index: {}]   ;;  %s972_s5 = inlined_call_operand.vmem [shape: f32[1,32], index: 5, kind: input, shape index: {}]   ;;  %s973_s6 = inlined_call_operand.vmem [shape: f32[1,32], index: 6, kind: input, shape index: {}]   ;;  %s974_s7 = inlined_call_operand.hbm [shape: f32[2,8,32], index: 7, kind: output, shape index: {}]  }
   0x1   :  { %s13_s26 = sshll.u32 %s967_s0, 4  ;;  %s14_s26 = int_to_ptr.vmem [resolvable:$true] %s13_s26 }
   0x2   :  { %16 = dma.vmem_to_smem %s14_s26, 16, %s774_s27, [#allocation4] }
   0x3   :  { %734 = dma.done.wait [#allocation4], 16 }
   0x4   :  { %735 = vsyncadd [#allocation4], 4294967280 }
   0x5   :  { %19 = sfence }
   0x6   :  { %20 = vsyncpa [#allocation7], 0 }
   0x7   :  { %22 = vsyncpa [#allocation7 + $0x1], 0  ;;  %s821_s28 = smov 0   ;;  %s823_s29 = smov 0  }
   0x8   :  { %s825_s30 = smov 0   ;;  %s827_s8 = smov 0  }
   0x9   :  { %s829_s9 = smov 0   ;;  %s831_s10 = smov 0  }
   0xa LB: > { %978 = sst [smem:[#allocation12_spill]] %s760_s9  ;;  %s556_s0 = sadd.s32 4294967295, %s764_s10   ;;  %s764_s10 = sphi %s831_s10, %s28_s10   ;;  %s760_s9 = sphi %s829_s9, %s984_s9   ;;  %s756_s8 = sphi %s827_s8, %s983_s8   ;;  %s752_s30 = sphi %s825_s30, %s987_s30   ;;  %s748_s29 = sphi %s823_s29, %s986_s29   ;;  %s744_s28 = sphi %s821_s28, %s985_s28  }
   0xb   : > { %s557_s11 = sadd.s32 4294967294, %s764_s10   ;;  %s40_s12 = sadd.s32 1, %s760_s9 }
   0xc   : > { %s168_s13 = sadd.s32 1, %s752_s30  ;;  %p42_p0 = scmp.ge.s32.totalorder %s40_s12, 2 }
   0xd   : > { %p178_p1 = scmp.ne.s32.totalorder %s752_s30, %s748_s29  ;;  %p179_p2 = scmp.eq.s32.totalorder %s556_s0, 1 }
   0xe   : > { %p184_p3 = scmp.ne.s32.totalorder %s748_s29, %s744_s28  ;;  %s989_s12 = smov (%p42_p0, %s40_s12), 0 }
   0xf   : > { %979 = sst [smem:[#allocation13_spill]] %s989_s12  ;;  %p861_p4 = por %p179_p2, %p178_p1 }
  0x10   : > { %p185_p5 = scmp.eq.s32.totalorder %s557_s11, 1  ;;  %s163_s15 = ssub.s32 %s760_s9, %s989_s12 }
  0x11   : > { %p560_p6 = scmp.ge.s32.totalorder %s764_s10, 1  ;;  %p166_p7 = scmp.eq.s32.totalorder %s163_s15, 0 }
  0x12   : > { %p868_p8 = por %p185_p5, %p184_p3  ;;  %p232_p9 = scmp.lt.s32.totalorder %s764_s10, 3 }
  0x13   : > { %s874_s17 = scalar_select %p166_p7, %s752_s30, %s168_s13  }
  0x14   : > { %p233_p10 = pnand %p560_p6, %p232_p9 }
  0x15   : > { %s975_s18 = sand.u32 (!%p233_p10), 1, %s748_s29   ;;  %p269_p11 = scmp.lt.s32.totalorder (!%p233_p10), %s756_s8, 1 }
  0x16   : > { %236 = sbr.rel (%p233_p10) target bundleno = 583 (0x247), region = 40  ;;  %s880_s19 = sshll.u32 (!%p233_p10), %s975_s18, 3 }
  0x17   : > { %s564_s20 = sshll.u32 (!%p233_p10), %s756_s8, 3  ;;  %s268_s11 = scalar_lea.vmem (!%p233_p10), [#allocation6], %s880_s19 }
  0x18   : > { %s766_s13 = smov (!%p233_p10), 0  }
  0x1b   : > { %s270_s21 = scalar_select %p269_p11, %s756_s8, 1 }
  0x1d   : > { %s562_s22 = sshll.u32 %s270_s21, 3 }
  0x1e   : > { %s275_s25 = scalar_lea.vmem %s968_s1, %s562_s22  ;;  %s282_s0 = scalar_lea.vmem %s969_s2, %s562_s22 }
  0x1f LB: >> { %s293_s15 = sadd.s32 %s768_s13, %s564_s20  ;;  %s296_s23 = scalar_lea.vmem [#allocation2], %s768_s13  ;;  %s768_s13 = sphi %s766_s13, %s292_s13  }
  0x20   : >> { %s294_s18 = sld [smem:[#allocation5 + %s293_s15]] }
  0x26   : >> { %s295_s21 = scalar_lea.vmem %s970_s3, %s294_s18 }
  0x27   : >> { %v311_v0 = vld [vmem:[%s295_s21] sm:$0x1] }
  0x28   : >> { %312 = vst [vmem:[%s296_s23] sm:$0x1] %v311_v0 }
  0x29   : >> { %330 = vsyncadd [#allocation3], 16  ;;  %s292_s13 = sadd.s32 1, %s768_s13  }
  0x2a   : >> { %p289_p12 = scmp.ge.s32.totalorder %s292_s13, 8  }
  0x2b   : > { %v333_v1 = vld [vmem:[%s275_s25] sm:$0xff] (%p289_p12)  ;;  %v775_v2 = vmov (%p289_p12), 0   ;;  %v572_v9 = vld [vmem:[%s971_s4 + $0x8] sm:$0xf] (%p289_p12)  ;;  %v581_v10 = vld [vmem:[%s971_s4 + $0x8] sm:$0xf0] (%p289_p12)  ;;  %v335_v12 = vlaneseq (%p289_p12) }
  0x2c   : > { %291 = sbr.rel (!%p289_p12) target bundleno = 31 (0x1f), region = 128  ;;  %657 = vset.pattern.permute.xlu0 (%p289_p12), %v775_v2  ;;  %v334_v3 = vld [vmem:[%s282_s0] sm:$0xff] (%p289_p12)  ;;  %v776_v15 = vmov (%p289_p12), 0.0   ;;  %s770_s23 = smov (%p289_p12), 0  }
  0x2d   : > { %338 = vperm.xlu0 (%p289_p12), %657, %v333_v1   ;;  %v341_v4 = vadd.s32 (%p289_p12), 16, %v334_v3  ;;  %v899_v5 = vld [vmem:[%s972_s5] sm:$0x1] (%p289_p12)  ;;  %v580_v8 = vld [vmem:[%s971_s4] sm:$0xf0] (%p289_p12)  ;;  %v336_v13 = vand.u32 (%p289_p12), 127, %v335_v12 }
  0x2e   : > { %v904_v6 = vld [vmem:[%s973_s6] sm:$0x1] (%p289_p12) }
  0x2f   : > { %v568_v7 = vld [vmem:[%s971_s4] sm:$0xf] (%p289_p12) }
  0x35   : > { %343 = vperm.xlu0 %657, %v341_v4  }
  0x9f   : > { %v339_v11 = vpop.permute.xlu0 %338 }
  0xa0   : > { %vm340_vm0 = vcmp.eq.s32.totalorder %v336_v13, %v339_v11 }
  0xa7   : > { %v344_v14 = vpop.permute.xlu0 %343 }
  0xa8   : > { %vm345_vm1 = vcmp.eq.s32.totalorder %v336_v13, %v344_v14 }
  0xa9   : > { %vm346_vm2 = vmor %vm340_vm0, %vm345_vm1 }
  0xaa   : > { %v565_v16 = vsel %vm346_vm2, 1.0, %v776_v15 }
  0xab   : > { %v349_v17 = vpack.c.bf16 %v565_v16, %v565_v16 }
  0xac LB: >> { %736 = dma.done.wait [#allocation3], 16  ;;  %s772_s23 = sphi %s770_s23, %s359_s23  }
  0xad   : >> { %737 = vsyncadd [#allocation3], 4294967280  ;;  %s359_s23 = sadd.s32 1, %s772_s23  }
  0xae   : >> { %p356_p13 = scmp.ge.s32.totalorder %s359_s23, 8  }
  0xaf   : > { %v573_v18 = vor.u32 (%p356_p13), %v581_v10, %v572_v9  ;;  %v569_v19 = vor.u32 (%p356_p13), %v580_v8, %v568_v7  ;;  %vm376_vm3 = vcmask (%p356_p13), 261120   ;;  %v363_v20 = vld [vmem:[#allocation2] sm:$0xff] (%p356_p13)  ;;  %v777_v25 = vmov (%p356_p13), 32.0   ;;  %s443_s9 = scalar_lea.hbm (%p356_p13), %s974_s7, %s564_s20  ;;  %s445_s12 = sshll.u32 (%p356_p13), %s268_s11, 4  ;;  %s446_s12 = int_to_ptr.vmem [resolvable:$true] %s445_s12 }
  0xb0   : > { %358 = sbr.rel (!%p356_p13) target bundleno = 172 (0xac), region = 139  ;;  %658 = vrcp.f32 (%p356_p13), %v777_v25  ;;  %v423_v46 = vperm.slane (%p356_p13), %v899_v5, 0  ;;  %v427_v49 = vperm.slane (%p356_p13), %v904_v6, 0  ;;  %s447_s18 = sshll.u32 (%p356_p13), %s443_s9, 4  ;;  %s448_s18 = int_to_ptr.hbm [resolvable:$true] %s447_s18 }
  0xb1   : > { %386 = vmatpush.bf16.msra.mxu0 (%p356_p13), %v573_v18  ;;  %s982_s8 = sand.u32 (%p356_p13), 1, %s748_s29   ;;  %s688_s25 = sshra.s32 (%p356_p13), %s448_s18, 4  ;;  %s689_s25 = int_to_ptr.hbm [resolvable:$true] %s688_s25 }
  0xb2   : > { %s432_s26 = scalar_lea.sflag (%p356_p13), [#allocation7], %s982_s8  ;;  %s690_s20 = scalar_lea.hbm (%p356_p13), %s689_s25, 8 }
  0xb3   : > { %p691_p0 = scmp.ne.s32.totalorder (%p356_p13), %s689_s25, %s690_s20  ;;  %s694_s13 = scalar_lea.hbm (%p356_p13), %s974_s7, 16 }
  0xb4   : > { %p695_p3 = scmp.lt.s32.totalorder (%p356_p13), %s689_s25, %s974_s7  ;;  %p696_p5 = scmp.lt.s32.totalorder (%p356_p13), %s694_s13, %s690_s20 }
  0xb5   : > { %387 = vmatpush.bf16.msra.mxu0 %v569_v19  ;;  %p692_p1 = pnand %p691_p0, %p861_p4 }
  0xb6   : > { %v659_v26 = vpop.eup %658  ;;  %p697_p6 = por %p696_p5, %p695_p3 }
  0xb7   : > { %v397_v27 = vmul.f32 32.0, %v659_v26  ;;  %vm401_vm4 = vweird.f32 %v659_v26  ;;  %p693_p2 = pneg %p692_p1 }
  0xb8   : > { %574 = vmatmul.msk.bf16.vlgmr.msra.gmra.mxu0 %vm376_vm3, %v349_v17 }
  0xb9   : > { %v398_v28 = vsub.f32 1.0, %v397_v27  ;;  %p698_p7 = pnand %p697_p6, %p693_p2 }
  0xbb   : > { %v399_v29 = vmul.f32 %v659_v26, %v398_v28 }
  0xbd   : > { %v400_v30 = vadd.f32 %v659_v26, %v399_v29 }
  0xbf   : > { %v402_v31 = vsel %vm401_vm4, %v659_v26, %v400_v30 }
 0x135   : > { %v389_v21 = vpop.f32.mrf.mxu0 }
 0x136   : > { %v390_v22 = vadd.f32 %v389_v21, %v363_v20 }
 0x138   : > { %v393_v23 = vsel %vm376_vm3, %v390_v22, 0.0 }
 0x139   : > { %394 = vadd.xlane.f32.xlu0 %v393_v23 }
 0x13d   : > { %v391_v24 = vpop.f32.mrf.mxu0 }
 0x1ac   : > { %v395_v32 = vpop.xlane.xlu0 %394 }
 0x1ad   : > { %v403_v33 = vmul.f32 %v402_v31, %v395_v32 }
 0x1af   : > { %v404_v34 = vsub.f32 %v390_v22, %v403_v33 }
 0x1b1   : > { %v405_v35 = vmul.f32 %v404_v34, %v404_v34 }
 0x1b3   : > { %v406_v36 = vsel %vm376_vm3, %v405_v35, 0.0 }
 0x1b4   : > { %407 = vadd.xlane.f32.xlu0 %v406_v36 }
 0x227   : > { %v408_v37 = vpop.xlane.xlu0 %407 }
 0x228   : > { %v409_v38 = vmul.f32 %v408_v37, %v402_v31 }
 0x22a   : > { %v410_v39 = vadd.f32 1e-12, %v409_v38 }
 0x22c   : > { %660 = vrsqrt.f32 %v410_v39  ;;  %vm417_vm6 = vweird.f32 %v410_v39 }
 0x232   : > { %v661_v40 = vpop.eup %660 }
 0x233   : > { %v412_v41 = vmul.f32 %v661_v40, %v410_v39  ;;  %vm418_vm5 = vweird.f32 %v661_v40 }
 0x234   : > { %vm419_vm7 = vmor %vm417_vm6, %vm418_vm5 }
 0x235   : > { %v413_v42 = vmul.f32 %v661_v40, %v412_v41 }
 0x237   : > { %v414_v43 = vmul.f32 0.5, %v413_v42 }
 0x239   : > { %v415_v44 = vsub.f32 1.5, %v414_v43 }
 0x23b   : > { %v416_v45 = vmul.f32 %v661_v40, %v415_v44 }
 0x23d   : > { %v420_v47 = vsel %vm419_vm7, %v661_v40, %v416_v45 }
 0x23e   : > { %v421_v48 = vmul.f32 %v420_v47, %v404_v34 }
 0x240   : > { %v425_v50 = vmul.f32 %v423_v46, %v421_v48 }
 0x242   : > { %v429_v51 = vadd.f32 %v427_v49, %v425_v50 }
 0x244   : > { %430 = vst.msk [vmem:[%s268_s11] sm:$0xff] %vm376_vm3, %v429_v51 }
 0x245   : > { %701 = shalt.err (!%p698_p7)
}
 0x246   : > { %582 = dma.vmem_to_hbm [thread:$0]  (%p861_p4), %s446_s12, 128, %s448_s18, %s432_s26  }
 0x247 PF: > { %p588_p9 = scmp.ge.s32.totalorder %s764_s10, 2  ;;  %s459_s19 = sand.u32 1, %s744_s28  }
 0x248   : > { %s460_s11 = scalar_lea.sflag [#allocation7], %s459_s19 }
 0x249   : > { %p585_p10 = pnand %p588_p9, %p868_p8 }
 0x24b   : > { %p586_p11 = pneg %p585_p10 }
 0x24d   : > { %739 = dma.done.wait (%p586_p11), %s460_s11, 128  }
 0x24e   : > { %741 = vsyncadd (%p586_p11), %s460_s11, 4294967168  ;;  %s28_s10 = sadd.s32 1, %s764_s10   ;;  %s983_s8 = sld [smem:[#allocation12_spill]] }
 0x24f   : > { %p25_p12 = scmp.ge.s32.totalorder %s28_s10, 4   ;;  %s984_s9 = sld [smem:[#allocation13_spill]] }
 0x250   : > { %s985_s28 = smov %s748_s29  ;;  %s986_s29 = smov %s752_s30 }
 0x251   : > { %s987_s30 = smov %s874_s17  ;;  %27 = sbr.rel (!%p25_p12) target bundleno = 10 (0xa), region = 150 }
 0x256   :  { %466 = vsyncpa [#allocation7], 1 }
 0x257   :  { %468 = vsyncpa [#allocation7 + $0x1], 1 }
 0x258   :  { %469 = vsyncmov [#allocation3] }
 0x25b   :  { %s470_s14 = vpop.sfrf %469 }
 0x25c   :  { %p579_p4 = scmp.ne.s32.totalorder %s470_s14, 0 }
 0x25e   :  { %474 = shalt.err (%p579_p4)  }

</bundles_post_ra>
